<compile_context>
chip_gen: v5e
topology: v5e:2x2
jax: 0.10.0
libtpu: 0.0.40
codegen_flags: <defaults>
</compile_context>

<pallas_src>
import jax
import jax.numpy as jnp
from jax.experimental import pallas as pl
from jax.experimental.pallas import tpu as pltpu

_MIB = 1 << 20
_TILE_BUDGET = 2 * _MIB       # target x tile bytes (review: 1-4 MiB)
_FUSED_MAX_SLICE = 8 * _MIB   # above this a single (1, C, HW) slice streams over HW


# ----------------------------------------------------------------------------
# Kernels
# ----------------------------------------------------------------------------
def _cca_fused_kernel(x_ref, w1a_ref, w1b_ref, w2t_ref, out_ref, attn_ref):
    # x_ref: (Bt, C, HW) f32; w1a/w1b: (C, R); w2t: (R, C)
    x = x_ref[...]
    s = jnp.sum(x, axis=-1)                              # (Bt, C)  (1/HW folded into w1a)
    mx = jnp.max(x, axis=-1)                             # (Bt, C)
    hidden = jnp.maximum(
        jnp.dot(s, w1a_ref[...], preferred_element_type=jnp.float32)
        + jnp.dot(mx, w1b_ref[...], preferred_element_type=jnp.float32), 0.0)
    attn = jax.nn.sigmoid(
        jnp.dot(hidden, w2t_ref[...], preferred_element_type=jnp.float32))  # (Bt, C)
    attn_ref[...] = attn[:, None, :]                     # (Bt, 1, C)
    out_ref[...] = x * attn[:, :, None]                  # lane-dense broadcast multiply


def _cca_pool_fc_kernel(x_ref, w1a_ref, w1b_ref, w2t_ref, attn_ref,
                        sum_sc, max_sc):
    # Streaming pass 1: accumulate sum/max over the HW ("arbitrary") axis.
    h = pl.program_id(1)

    @pl.when(h == 0)
    def _():
        sum_sc[...] = jnp.zeros_like(sum_sc)
        max_sc[...] = jnp.full_like(max_sc, -jnp.inf)

    x = x_ref[...]
    sum_sc[...] += jnp.sum(x, axis=-1)
    max_sc[...] = jnp.maximum(max_sc[...], jnp.max(x, axis=-1))

    @pl.when(h == pl.num_programs(1) - 1)
    def _():
        hidden = jnp.maximum(
            jnp.dot(sum_sc[...], w1a_ref[...], preferred_element_type=jnp.float32)
            + jnp.dot(max_sc[...], w1b_ref[...], preferred_element_type=jnp.float32),
            0.0)
        attn = jax.nn.sigmoid(
            jnp.dot(hidden, w2t_ref[...], preferred_element_type=jnp.float32))
        attn_ref[...] = attn[:, None, :]


def _cca_scale_kernel(x_ref, attn_ref, out_ref):
    # Streaming pass 2: broadcast multiply.
    a = attn_ref[...][:, 0, :, None]                     # (Bt, C, 1)
    out_ref[...] = x_ref[...] * a


# ----------------------------------------------------------------------------
# Tiling helpers
# ----------------------------------------------------------------------------
def _vmem_limit(per_step_tile_bytes):
    # Double-buffered pipelined tiles + weights / small buffers headroom.
    est = 2 * per_step_tile_bytes + 4 * _MIB
    return int(min(64 * _MIB, max(32 * _MIB, est)))


def _largest_divisor_leq(n, cap):
    cap = max(1, min(n, int(cap)))
    for d in range(cap, 0, -1):
        if n % d == 0:
            return d
    return 1


def _pick_batch_block(B, per_batch_bytes):
    max_by_budget = max(1, _TILE_BUDGET // max(1, per_batch_bytes))
    cap = min(B, max_by_budget)
    if B >= 8:
        # keep >= 8 grid steps so leading/trailing DMA is hidden and both
        # v7x TensorCores get pipelined work under "parallel".
        cap = min(cap, max(1, B // 8))
    return _largest_divisor_leq(B, cap)


def _pick_hw_block(HW, C, itemsize):
    # Largest multiple-of-128 divisor of HW whose (C, hw) tile fits the budget.
    max_elems = max(128, _TILE_BUDGET // max(1, C * itemsize))
    d = (min(HW, max_elems) // 128) * 128
    while d >= 128:
        if HW % d == 0:
            return d
        d -= 128
    return None


# ----------------------------------------------------------------------------
# pallas_call wrappers
# ----------------------------------------------------------------------------
def _run_fused(x_flat, w1a, w1b, w2t, Bt, donate_x):
    B, C, HW = x_flat.shape
    R = w1a.shape[1]
    x_tile_bytes = Bt * C * HW * 4
    kwargs = {"input_output_aliases": {0: 0}} if donate_x else {}
    return pl.pallas_call(
        _cca_fused_kernel,
        grid=(B // Bt,),
        in_specs=[
            pl.BlockSpec((Bt, C, HW), lambda b: (b, 0, 0)),
            pl.BlockSpec((C, R), lambda b: (0, 0)),       # VMEM-resident weights
            pl.BlockSpec((C, R), lambda b: (0, 0)),
            pl.BlockSpec((R, C), lambda b: (0, 0)),
        ],
        out_specs=[
            pl.BlockSpec((Bt, C, HW), lambda b: (b, 0, 0)),
            pl.BlockSpec((Bt, 1, C), lambda b: (b, 0, 0)),
        ],
        out_shape=[
            jax.ShapeDtypeStruct((B, C, HW), jnp.float32),
            jax.ShapeDtypeStruct((B, 1, C), jnp.float32),
        ],
        compiler_params=pltpu.CompilerParams(
            dimension_semantics=("parallel",),
            vmem_limit_bytes=_vmem_limit(2 * x_tile_bytes)),
        **kwargs,
    )(x_flat, w1a, w1b, w2t)


def _run_two_phase(x_flat, w1a, w1b, w2t, Bt, HWt, donate_x):
    B, C, HW = x_flat.shape
    R = w1a.shape[1]
    n_b, n_hw = B // Bt, HW // HWt
    x_tile_bytes = Bt * C * HWt * 4

    attn = pl.pallas_call(
        _cca_pool_fc_kernel,
        grid=(n_b, n_hw),
        in_specs=[
            pl.BlockSpec((Bt, C, HWt), lambda b, h: (b, 0, h)),
            pl.BlockSpec((C, R), lambda b, h: (0, 0)),
            pl.BlockSpec((C, R), lambda b, h: (0, 0)),
            pl.BlockSpec((R, C), lambda b, h: (0, 0)),
        ],
        out_specs=pl.BlockSpec((Bt, 1, C), lambda b, h: (b, 0, 0)),
        out_shape=jax.ShapeDtypeStruct((B, 1, C), jnp.float32),
        scratch_shapes=[pltpu.VMEM((Bt, C), jnp.float32),
                        pltpu.VMEM((Bt, C), jnp.float32)],
        compiler_params=pltpu.CompilerParams(
            dimension_semantics=("parallel", "arbitrary"),
            vmem_limit_bytes=_vmem_limit(x_tile_bytes)),
    )(x_flat, w1a, w1b, w2t)

    kwargs = {"input_output_aliases": {0: 0}} if donate_x else {}
    out = pl.pallas_call(
        _cca_scale_kernel,
        grid=(n_b, n_hw),
        in_specs=[
            pl.BlockSpec((Bt, C, HWt), lambda b, h: (b, 0, h)),
            pl.BlockSpec((Bt, 1, C), lambda b, h: (b, 0, 0)),
        ],
        out_specs=pl.BlockSpec((Bt, C, HWt), lambda b, h: (b, 0, h)),
        out_shape=jax.ShapeDtypeStruct((B, C, HW), jnp.float32),
        compiler_params=pltpu.CompilerParams(
            dimension_semantics=("parallel", "parallel"),
            vmem_limit_bytes=_vmem_limit(2 * x_tile_bytes)),
        **kwargs,
    )(x_flat, attn)
    return out, attn


def clinical_channel_attention(x, w1, w2, *, mode="auto", batch_block=None,
                               hw_block=None, donate_x=False):
    """x: (B, C, H, W); w1: (R, 2C); w2: (C, R).  Returns (out, attn)."""
    B, C, H, W = x.shape
    HW = H * W
    R = w1.shape[0]
    assert w1.shape == (R, 2 * C) and w2.shape == (C, R)

    x_flat = x.reshape(B, C, HW).astype(jnp.float32)
    # Pre-split W1^T (no in-kernel concat); fold the 1/HW mean scale into the
    # avg-branch half so the kernel only needs a raw lane-axis sum.
    w1a = jnp.asarray(w1[:, :C].T, jnp.float32) / float(HW)   # (C, R) for sum-pool
    w1b = jnp.asarray(w1[:, C:].T, jnp.float32)               # (C, R) for max-pool
    w2t = jnp.asarray(w2.T, jnp.float32)                      # (R, C)

    per_batch_bytes = C * HW * 4
    if mode == "auto":
        mode = "fused" if per_batch_bytes <= _FUSED_MAX_SLICE else "two_phase"

    if mode == "two_phase":
        hb = hw_block if hw_block is not None else _pick_hw_block(HW, C, 4)
        if hb is not None and HW % hb == 0:
            if batch_block is not None:
                Bt = batch_block
                assert B % Bt == 0
            else:
                Bt = _largest_divisor_leq(
                    B, max(1, _TILE_BUDGET // max(1, C * hb * 4)))
            out, attn = _run_two_phase(x_flat, w1a, w1b, w2t, Bt, hb, donate_x)
            return out.reshape(B, C, H, W), attn.reshape(B, C)
        # TODO(synk): no multiple-of-128 divisor of H*W -> fall back to the
        # fused path (spatial pad/repack for lane-density not implemented).
        mode = "fused"

    if batch_block is not None:
        Bt = batch_block
        assert B % Bt == 0, "batch must be divisible by batch_block"
    else:
        Bt = _pick_batch_block(B, per_batch_bytes)
    out, attn = _run_fused(x_flat, w1a, w1b, w2t, Bt, donate_x)

    # attn matches PyTorch's attn.squeeze() for B > 1 (shape (B, C)).
    # TODO(synk): for B == 1 PyTorch also squeezes the batch dim ((C,)); apply
    # jnp.squeeze in the caller if that exact degenerate shape is needed.
    return out.reshape(B, C, H, W), attn.reshape(B, C)


# ----------------------------------------------------------------------------
# Pure-JAX reference (verification only).
# ----------------------------------------------------------------------------
def reference_forward(x, w1, w2):
    avg = jnp.mean(x, axis=(2, 3))                        # (B, C)
    mx = jnp.max(x, axis=(2, 3))                          # (B, C)
    combined = jnp.concatenate([avg, mx], axis=1)         # (B, 2C)
    h = jax.nn.relu(combined @ w1.T)                      # (B, R)
    attn = jax.nn.sigmoid(h @ w2.T)                       # (B, C)
    out = x * attn[:, :, None, None]
    return out, attn


if __name__ == "__main__":
    B, C, H, W = 2, 16, 16, 16
    reduction = 12
    R = max(C // reduction, 8)                            # reduced = 8

    key = jax.random.PRNGKey(0)
    kx, k1, k2 = jax.random.split(key, 3)
    x = jax.random.normal(kx, (B, C, H, W), jnp.float32)
    # Linear(channels*2, reduced, bias=False) / Linear(reduced, channels, bias=False)
    w1 = 0.3 * jax.random.normal(k1, (R, 2 * C), jnp.float32)
    w2 = 0.3 * jax.random.normal(k2, (C, R), jnp.float32)

    ref_out, ref_attn = reference_forward(x, w1, w2)

    # 1) Fused path, auto-selected tiling.
    out, attn = clinical_channel_attention(x, w1, w2)
    jax.block_until_ready((out, attn))
    assert out.shape == (B, C, H, W) and attn.shape == (B, C)
    assert jnp.allclose(out, ref_out, atol=1e-5, rtol=1e-5)
    assert jnp.allclose(attn, ref_attn, atol=1e-5, rtol=1e-5)

    # 2) Fused path with multiple grid steps (exercises Bt < B blocking).
    out1, attn1 = clinical_channel_attention(x, w1, w2, batch_block=1)
    jax.block_until_ready((out1, attn1))
    assert jnp.allclose(out1, ref_out, atol=1e-5, rtol=1e-5)
    assert jnp.allclose(attn1, ref_attn, atol=1e-5, rtol=1e-5)

    # 3) Two-phase streaming path (used automatically for large C*H*W).
    out2, attn2 = clinical_channel_attention(x, w1, w2, mode="two_phase",
                                             hw_block=128)
    jax.block_until_ready((out2, attn2))
    assert jnp.allclose(out2, ref_out, atol=1e-5, rtol=1e-5)
    assert jnp.allclose(attn2, ref_attn, atol=1e-5, rtol=1e-5)

    print("KERNEL_OK")
</pallas_src>

<mosaic_0001>
module attributes {stable_mosaic.version = 11 : i64} {
  func.func @_cca_fused_kernel(%arg0: i32, %arg1: memref<2x16x256xf32, #tpu.memory_space<vmem>>, %arg2: memref<16x8xf32, #tpu.memory_space<vmem>>, %arg3: memref<16x8xf32, #tpu.memory_space<vmem>>, %arg4: memref<8x16xf32, #tpu.memory_space<vmem>>, %arg5: memref<2x16x256xf32, #tpu.memory_space<vmem>>, %arg6: memref<2x1x16xf32, #tpu.memory_space<vmem>>) attributes {dimension_semantics = [#tpu.dimension_semantics<parallel>], iteration_bounds = array<i64: 1>, scalar_prefetch = 0 : i64, scratch_operands = 0 : i64, tpu.core_type = #tpu.core_type<tc>, window_params = [{transform_indices = @transform_0, window_bounds = array<i64: 2, 16, 256>}, {pipeline_mode = #tpu.pipeline_mode<synchronous>, transform_indices = @transform_1, window_bounds = array<i64: 16, 8>}, {pipeline_mode = #tpu.pipeline_mode<synchronous>, transform_indices = @transform_2, window_bounds = array<i64: 16, 8>}, {pipeline_mode = #tpu.pipeline_mode<synchronous>, transform_indices = @transform_3, window_bounds = array<i64: 8, 16>}, {transform_indices = @transform_4, window_bounds = array<i64: 2, 16, 256>}, {transform_indices = @transform_5, window_bounds = array<i64: 2, 1, 16>}]} {
    %c0 = arith.constant 0 : index
    %c0_0 = arith.constant 0 : index
    %c0_1 = arith.constant 0 : index
    %0 = vector.load %arg1[%c0, %c0_0, %c0_1] : memref<2x16x256xf32, #tpu.memory_space<vmem>>, vector<2x16x256xf32>
    %cst = arith.constant dense<0.000000e+00> : vector<2x16xf32>
    %1 = vector.multi_reduction <add>, %0, %cst [2] : vector<2x16x256xf32> to vector<2x16xf32>
    %cst_2 = arith.constant dense<0xFF800000> : vector<2x16xf32>
    %2 = vector.multi_reduction <maximumf>, %0, %cst_2 [2] : vector<2x16x256xf32> to vector<2x16xf32>
    %c0_3 = arith.constant 0 : index
    %c0_4 = arith.constant 0 : index
    %3 = vector.load %arg2[%c0_3, %c0_4] : memref<16x8xf32, #tpu.memory_space<vmem>>, vector<16x8xf32>
    %cst_5 = arith.constant dense<0.000000e+00> : vector<2x8xf32>
    %4 = tpu.matmul %1, %3, %cst_5 {dimension_numbers = #tpu.dot_dimension_numbers<[1], [0], [0], [1], [0, 0, 1, 1], [], []>} : vector<2x16xf32>, vector<16x8xf32>, vector<2x8xf32> -> vector<2x8xf32>
    %c0_6 = arith.constant 0 : index
    %c0_7 = arith.constant 0 : index
    %5 = vector.load %arg3[%c0_6, %c0_7] : memref<16x8xf32, #tpu.memory_space<vmem>>, vector<16x8xf32>
    %cst_8 = arith.constant dense<0.000000e+00> : vector<2x8xf32>
    %6 = tpu.matmul %2, %5, %cst_8 {dimension_numbers = #tpu.dot_dimension_numbers<[1], [0], [0], [1], [0, 0, 1, 1], [], []>} : vector<2x16xf32>, vector<16x8xf32>, vector<2x8xf32> -> vector<2x8xf32>
    %7 = arith.addf %4, %6 : vector<2x8xf32>
    %cst_9 = arith.constant 0.000000e+00 : f32
    %8 = vector.broadcast %cst_9 : f32 to vector<2x8xf32>
    %9 = arith.maximumf %7, %8 : vector<2x8xf32>
    %c0_10 = arith.constant 0 : index
    %c0_11 = arith.constant 0 : index
    %10 = vector.load %arg4[%c0_10, %c0_11] : memref<8x16xf32, #tpu.memory_space<vmem>>, vector<8x16xf32>
    %cst_12 = arith.constant dense<0.000000e+00> : vector<2x16xf32>
    %11 = tpu.matmul %9, %10, %cst_12 {dimension_numbers = #tpu.dot_dimension_numbers<[1], [0], [0], [1], [0, 0, 1, 1], [], []>} : vector<2x8xf32>, vector<8x16xf32>, vector<2x16xf32> -> vector<2x16xf32>
    %12 = arith.negf %11 : vector<2x16xf32>
    %13 = math.exp %12 : vector<2x16xf32>
    %cst_13 = arith.constant 1.000000e+00 : f32
    %14 = vector.broadcast %cst_13 : f32 to vector<2x16xf32>
    %15 = arith.addf %14, %13 : vector<2x16xf32>
    %16 = arith.divf %14, %15 : vector<2x16xf32>
    %17 = vector.shape_cast %16 : vector<2x16xf32> to vector<2x1x16xf32>
    %c0_14 = arith.constant 0 : index
    %c0_15 = arith.constant 0 : index
    %c0_16 = arith.constant 0 : index
    %18 = vector.load %arg6[%c0_14, %c0_15, %c0_16] : memref<2x1x16xf32, #tpu.memory_space<vmem>>, vector<2x1x16xf32>
    tpu.vector_store %arg6[%c0_14, %c0_15, %c0_16], %17 {strides = array<i32>} : memref<2x1x16xf32, #tpu.memory_space<vmem>>, vector<2x1x16xf32>,
    %19 = vector.shape_cast %16 : vector<2x16xf32> to vector<2x16x1xf32>
    %20 = vector.broadcast %19 : vector<2x16x1xf32> to vector<2x16x256xf32>
    %21 = arith.mulf %0, %20 : vector<2x16x256xf32>
    %c0_17 = arith.constant 0 : index
    %c0_18 = arith.constant 0 : index
    %c0_19 = arith.constant 0 : index
    %22 = vector.load %arg5[%c0_17, %c0_18, %c0_19] : memref<2x16x256xf32, #tpu.memory_space<vmem>>, vector<2x16x256xf32>
    tpu.vector_store %arg5[%c0_17, %c0_18, %c0_19], %21 {strides = array<i32>} : memref<2x16x256xf32, #tpu.memory_space<vmem>>, vector<2x16x256xf32>,
    return
  }
  func.func @transform_0(%arg0: i32) -> (i32, i32, i32) {
    %c0_i32 = arith.constant 0 : i32
    %c0_i32_0 = arith.constant 0 : i32
    %c0_i32_1 = arith.constant 0 : i32
    return %arg0, %c0_i32, %c0_i32_0 : i32, i32, i32
  }
  func.func @transform_1(%arg0: i32) -> (i32, i32) {
    %c0_i32 = arith.constant 0 : i32
    %c0_i32_0 = arith.constant 0 : i32
    %c0_i32_1 = arith.constant 0 : i32
    return %c0_i32, %c0_i32_0 : i32, i32
  }
  func.func @transform_2(%arg0: i32) -> (i32, i32) {
    %c0_i32 = arith.constant 0 : i32
    %c0_i32_0 = arith.constant 0 : i32
    %c0_i32_1 = arith.constant 0 : i32
    return %c0_i32, %c0_i32_0 : i32, i32
  }
  func.func @transform_3(%arg0: i32) -> (i32, i32) {
    %c0_i32 = arith.constant 0 : i32
    %c0_i32_0 = arith.constant 0 : i32
    %c0_i32_1 = arith.constant 0 : i32
    return %c0_i32, %c0_i32_0 : i32, i32
  }
  func.func @transform_4(%arg0: i32) -> (i32, i32, i32) {
    %c0_i32 = arith.constant 0 : i32
    %c0_i32_0 = arith.constant 0 : i32
    %c0_i32_1 = arith.constant 0 : i32
    return %arg0, %c0_i32, %c0_i32_0 : i32, i32, i32
  }
  func.func @transform_5(%arg0: i32) -> (i32, i32, i32) {
    %c0_i32 = arith.constant 0 : i32
    %c0_i32_0 = arith.constant 0 : i32
    %c0_i32_1 = arith.constant 0 : i32
    return %arg0, %c0_i32, %c0_i32_0 : i32, i32, i32
  }
}

</mosaic_0001>

<bundles_post_ra>
// kernel: tpu_custom_call.1
= control target key start
LH: loop header
LB: loop body
LE: loop exit
PB: predicated region body
PF: predicated region fallthrough
CT: control target
= control target key end

     0   :  { %11 = vsyncpa [#allocation3], 0  ;;  %s483_s0 = inlined_call_operand.hbm [shape: f32[2,16,256], index: 0, kind: input, shape index: {}]   ;;  %s484_s1 = inlined_call_operand.vmem [shape: f32[16,8], index: 1, kind: input, shape index: {}]   ;;  %s485_s2 = inlined_call_operand.vmem [shape: f32[16,8], index: 2, kind: input, shape index: {}]   ;;  %s486_s3 = inlined_call_operand.vmem [shape: f32[8,16], index: 3, kind: input, shape index: {}]   ;;  %s487_s4 = inlined_call_operand.hbm [shape: f32[2,16,256], index: 4, kind: output, shape index: {0}]   ;;  %s488_s5 = inlined_call_operand.hbm [shape: f32[2,1,16], index: 5, kind: output, shape index: {1}]  }
   0x1   :  { %12 = vsyncpa [#allocation4], 0 }
   0x2   :  { %13 = vsyncpa [#allocation7], 0  ;;  %s18_s20 = sshll.u32 %s483_s0, 4  ;;  %s371_s21 = smov [#allocation2]   ;;  %s19_s20 = int_to_ptr.hbm [resolvable:$true] %s18_s20 }
   0x3   :  { %s20_s22 = sshll.u32 %s371_s21, 4  ;;  %s372_s23 = smov 256   ;;  %s21_s22 = int_to_ptr.vmem [resolvable:$true] %s20_s22 }
   0x4   :  { %s373_s24 = smov 16  }
   0x5   :  { %26 = dma.hbm_to_vmem [thread:$0]  %s19_s20, 1024, %s21_s22, [#allocation3], %s372_s23, %s372_s23, %s373_s24  }
   0x6   :  { %365 = dma.done.wait [#allocation3], 1024  }
   0x7   :  { %366 = vsyncadd [#allocation3], 4294966272  ;;  %v413_v0 = vld [vmem:[#allocation2 + $0x20] sm:$0xff]  ;;  %v415_v1 = vld [vmem:[#allocation2 + $0x28] sm:$0xff]  ;;  %v77_v20 = vlaneseq  ;;  %vm82_vm0 = vcmask 130112   ;;  %vm87_vm1 = vcmask 1041409  }
   0x8   :  { %v417_v2 = vld [vmem:[#allocation2] sm:$0xff]  ;;  %v51_v3 = vadd.f32 %v415_v1, %v413_v0  ;;  %v421_v4 = vld [vmem:[#allocation2 + $0x8] sm:$0xff]  ;;  %v427_v7 = vld [vmem:[#allocation2 + $0x30] sm:$0xff]  ;;  %v63_v15 = vmax.f32 %v413_v0, %v415_v1  ;;  %vm89_vm2 = vcmask 130048   ;;  %vm147_vm3 = vcmask 64512   ;;  %s257_s10 = sshll.u32 %s488_s5, 4  ;;  %s258_s10 = int_to_ptr.hbm [resolvable:$true] %s257_s10 }
   0x9   :  { %v57_v5 = vmax.f32 %v417_v2, %v421_v4  ;;  %v45_v6 = vadd.f32 %v421_v4, %v417_v2  ;;  %v429_v8 = vld [vmem:[#allocation2 + $0x38] sm:$0xff]  ;;  %v431_v9 = vld [vmem:[#allocation2 + $0x10] sm:$0xff]  ;;  %v70_v16 = vld [vmem:[%s484_s1 + $0x8] sm:$0xff]  ;;  %v78_v23 = vand.u32 127, %v77_v20  ;;  %v198_v50 = vshrl.u32 %v77_v20, 7  ;;  %s375_s11 = smov 1  }
   0xa   :  { %52 = vadd.xlane.f32.xlu1 %v51_v3  ;;  %v433_v10 = vld [vmem:[#allocation2 + $0x18] sm:$0xff]  ;;  %v54_v11 = vadd.f32 %v429_v8, %v427_v7  ;;  %v66_v14 = vmax.f32 %v427_v7, %v429_v8  ;;  %v69_v17 = vld [vmem:[%s484_s1] sm:$0xff]  ;;  %139 = vmatpush.msra.mxu1 %v70_v16  ;;  %v72_v18 = vld [vmem:[%s485_s2 + $0x8] sm:$0xff]  ;;  %vm193_vm7 = vcmask 122880   ;;  %s376_s5 = smov [#allocation5]   ;;  %s244_s15 = sshll.u32 %s487_s4, 4  ;;  %s245_s15 = int_to_ptr.hbm [resolvable:$true] %s244_s15 }
   0xb   :  { %58 = vmax.xlane.f32.xlu2 %v57_v5  ;;  %46 = vadd.xlane.f32.xlu0 %v45_v6  ;;  %v60_v12 = vmax.f32 %v431_v9, %v433_v10  ;;  %v48_v13 = vadd.f32 %v433_v10, %v431_v9  ;;  %v71_v19 = vld [vmem:[%s485_s2] sm:$0xff]  ;;  %v80_v25 = vadd.s32 4294967288, %v78_v23  ;;  %v205_v51 = vadd.s32 8, %v198_v50  ;;  %s242_s12 = sshll.u32 %s376_s5, 4  ;;  %s243_s12 = int_to_ptr.vmem [resolvable:$true] %s242_s12 }
   0xc   :  { %140 = vmatpush.msra.mxu1 %v69_v17  ;;  %106 = vmatpush.msra.mxu0 %v72_v18  ;;  %v146_v45 = vld [vmem:[%s486_s3] sm:$0xff]  ;;  %s374_s3 = smov [#allocation6]  }
   0xd   :  { %166 = vmatpush.msra.mxu2 %v146_v45  ;;  %287 = vset.pattern.permute.xlu1 %v198_v50  ;;  %s255_s7 = sshll.u32 %s374_s3, 4  ;;  %s256_s7 = int_to_ptr.vmem [resolvable:$true] %s255_s7 }
   0xe   :  { %107 = vmatpush.msra.mxu0 %v71_v19  ;;  %285 = vset.pattern.permute.xlu2 %v198_v50 }
   0xf   :  { %286 = vset.pattern.permute.xlu0 %v205_v51 }
  0x12   :  { %55 = vadd.xlane.f32.xlu1 %v54_v11 }
  0x13   :  { %61 = vmax.xlane.f32.xlu2 %v60_v12  ;;  %49 = vadd.xlane.f32.xlu0 %v48_v13 }
  0x1a   :  { %67 = vmax.xlane.f32.xlu1 %v66_v14 }
  0x1b   :  { %64 = vmax.xlane.f32.xlu0 %v63_v15 }
  0x7d   :  { %v53_v21 = vpop.xlane.xlu1 %52 }
  0x7e   :  { %v47_v22 = vpop.xlane.xlu0 %46  ;;  %v59_v24 = vpop.xlane.xlu2 %58  ;;  %v119_v27 = vperm.slane %v53_v21, %v78_v23 }
  0x7f   :  { %v116_v30 = vperm.slane %v47_v22, %v78_v23  ;;  %v79_v36 = vperm.slane %v59_v24, %v78_v23 }
  0x85   :  { %v56_v26 = vpop.xlane.xlu1 %55 }
  0x86   :  { %v120_v28 = vperm.slane %v56_v26, %v80_v25  ;;  %v50_v29 = vpop.xlane.xlu0 %49  ;;  %v62_v34 = vpop.xlane.xlu2 %61 }
  0x87   :  { %v117_v31 = vperm.slane %v50_v29, %v80_v25  ;;  %v81_v37 = vperm.slane %v62_v34, %v80_v25 }
  0x88   :  { %v121_v32 = vsel %vm82_vm0, %v120_v28, %v119_v27 }
  0x89   :  { %v118_v33 = vsel %vm82_vm0, %v117_v31, %v116_v30  ;;  %v83_v42 = vsel %vm82_vm0, %v81_v37, %v79_v36 }
  0x8a   :  { %v122_v35 = vsel %vm87_vm1, %v121_v32, %v118_v33 }
  0x8b   :  { %276 = vmatmul.msk.f32.vlgmr.msra.gmra.mxu1 %vm89_vm2, %v122_v35 }
  0x8d   :  { %v68_v38 = vpop.xlane.xlu1 %67 }
  0x8e   :  { %v85_v39 = vperm.slane %v68_v38, %v80_v25  ;;  %v65_v40 = vpop.xlane.xlu0 %64 }
  0x8f   :  { %v84_v41 = vperm.slane %v65_v40, %v78_v23 }
  0x91   :  { %v86_v43 = vsel %vm82_vm0, %v85_v39, %v84_v41 }
  0x92   :  { %v88_v44 = vsel %vm87_vm1, %v86_v43, %v83_v42 }
  0x93   :  { %275 = vmatmul.msk.f32.vlgmr.msra.gmra.mxu0 %vm89_vm2, %v88_v44 }
 0x108   :  { %v142_v46 = vpop.f32.mrf.mxu1 }
 0x110   :  { %v109_v47 = vpop.f32.mrf.mxu0 }
 0x111   :  { %v143_v48 = vadd.f32 %v142_v46, %v109_v47 }
 0x113   :  { %v145_v49 = vmax.f32 %v143_v48, 0.0 }
 0x115   :  { %277 = vmatmul.msk.f32.vlgmr.msra.gmra.mxu2 %vm147_vm3, %v145_v49 }
 0x198   :  { %v168_v52 = vpop.f32.mrf.mxu2 }
 0x199   :  { %v278_v53 = vmul.f32 -1.442695, %v168_v52 }
 0x19b   :  { %289 = vpow2.f32 %v278_v53 }
 0x1a1   :  { %v290_v54 = vpop.eup %289 }
 0x1a2   :  { %v174_v55 = vadd.f32 1.0, %v290_v54 }
 0x1a4   :  { %291 = vrcp.f32 %v174_v55  ;;  %v186_v59 = vand.u32 2147483648, %v174_v55  ;;  %v184_v61 = vand.u32 2147483647, %v174_v55  ;;  %vm180_vm5 = vweird.f32 %v174_v55 }
 0x1a6   :  { %v187_v63 = vor.u32 1.1754944e-38, %v186_v59  ;;  %vm185_vm8 = vcmp.eq.f32.partialorder %v184_v61, 8.507059e+37 }
 0x1aa   :  { %v292_v56 = vpop.eup %291 }
 0x1ab   :  { %v176_v57 = vmul.f32 %v292_v56, %v174_v55  ;;  %vm181_vm4 = vweird.f32 %v292_v56 }
 0x1ac   :  { %vm182_vm6 = vmor %vm180_vm5, %vm181_vm4 }
 0x1ad   :  { %v177_v58 = vsub.f32 1.0, %v176_v57 }
 0x1af   :  { %v178_v60 = vmul.f32 %v292_v56, %v177_v58 }
 0x1b1   :  { %v179_v62 = vadd.f32 %v292_v56, %v178_v60 }
 0x1b3   :  { %v183_v3 = vsel %vm182_vm6, %v292_v56, %v179_v62 }
 0x1b4   :  { %v188_v5 = vsel %vm185_vm8, %v187_v63, %v183_v3 }
 0x1b5   :  { %v209_v6 = vperm.slane %v188_v5, 1  ;;  %v191_v11 = vrot.slane %v188_v5, 1  ;;  %v196_v12 = vperm.slane %v188_v5, 0  ;;  %194 = vst.msk [vmem:[#allocation6] sm:$0x1] %vm193_vm7, %v188_v5 }
 0x1b7   :  { %214 = vperm.xlu1 %287, %v209_v6   ;;  %207 = vperm.xlu0 %286, %v196_v12   ;;  %195 = vst.msk [vmem:[#allocation6 + $0x1] sm:$0x1] %vm193_vm7, %v191_v11 }
 0x1b8   :  { %201 = vperm.xlu2 %285, %v196_v12   ;;  %263 = dma.vmem_to_hbm [thread:$0]  %s256_s7, 32, %s258_s10, [#allocation7], %s373_s24, %s373_s24, %s375_s11  }
 0x1c0   :  { %288 = vset.pattern.permute.xlu2 %v205_v51 }
 0x1c8   :  { %220 = vperm.xlu2 %288, %v209_v6  }
 0x212   :  { %v202_v13 = vpop.permute.xlu2 %201 }
 0x213   :  { %v222_v14 = vmul.f32 %v202_v13, %v417_v2  ;;  %v223_v15 = vmul.f32 %v202_v13, %v421_v4 }
 0x215   :  { %230 = vst [vmem:[#allocation5] sm:$0xff] %v222_v14 }
 0x216   :  { %231 = vst [vmem:[#allocation5 + $0x8] sm:$0xff] %v223_v15 }
 0x222   :  { %v221_v16 = vpop.permute.xlu2 %220 }
 0x223   :  { %v228_v17 = vmul.f32 %v221_v16, %v427_v7  ;;  %v229_v18 = vmul.f32 %v221_v16, %v429_v8 }
 0x225   :  { %236 = vst [vmem:[#allocation5 + $0x30] sm:$0xff] %v228_v17 }
 0x226   :  { %237 = vst [vmem:[#allocation5 + $0x38] sm:$0xff] %v229_v18 }
 0x229   :  { %v215_v19 = vpop.permute.xlu1 %214  ;;  %v208_v20 = vpop.permute.xlu0 %207 }
 0x22a   :  { %v226_v21 = vmul.f32 %v215_v19, %v413_v0  ;;  %v227_v22 = vmul.f32 %v215_v19, %v415_v1  ;;  %v224_v23 = vmul.f32 %v208_v20, %v431_v9  ;;  %v225_v2 = vmul.f32 %v208_v20, %v433_v10 }
 0x22c   :  { %234 = vst [vmem:[#allocation5 + $0x20] sm:$0xff] %v226_v21 }
 0x22d   :  { %235 = vst [vmem:[#allocation5 + $0x28] sm:$0xff] %v227_v22 }
 0x22e   :  { %232 = vst [vmem:[#allocation5 + $0x10] sm:$0xff] %v224_v23 }
 0x22f   :  { %233 = vst [vmem:[#allocation5 + $0x18] sm:$0xff] %v225_v2 }
 0x230   :  { %250 = dma.vmem_to_hbm [thread:$0]  %s243_s12, 1024, %s245_s15, [#allocation4], %s372_s23, %s372_s23, %s373_s24  }
 0x231   :  { %367 = dma.done.wait [#allocation4], 1024  }
 0x232   :  { %368 = vsyncadd [#allocation4], 4294966272 }
 0x233   :  { %369 = dma.done.wait [#allocation7], 32  }
 0x234   :  { %370 = vsyncadd [#allocation7], 4294967264 }
 0x235   :  { %272 = vsyncpa [#allocation3], 1 }
 0x236   :  { %273 = vsyncpa [#allocation4], 1 }
 0x237   :  { %274 = vsyncpa [#allocation7], 1 }

</bundles_post_ra>
